<compile_context>
chip_gen: v5e
topology: v5e:2x2
jax: 0.10.0
libtpu: 0.0.40
codegen_flags: <defaults>
</compile_context>

<pallas_src>
import functools

import jax
import jax.numpy as jnp
from jax import lax
from jax.experimental import pallas as pl
from jax.experimental.pallas import tpu as pltpu

MARGIN = 1.0


def _sumsq_kernel(emb1_ref, emb2_ref, out_ref, acc_ref, *, true_b, need_mask):
    """Accumulate sum over rows of (emb1-emb2)^2 into an (8, D) f32 accumulator.

    out_ref: (1, 8, D) per-partial sum, written once on the last reduction step.
    """
    p = pl.program_id(0)
    t = pl.program_id(1)

    @pl.when(t == 0)
    def _():
        acc_ref[...] = jnp.zeros_like(acc_ref)  # (8, D): negligible init cost

    row_tile, d = emb1_ref.shape

    # Hot path: pure VPU elementwise work on a large lane-dense tile.
    diff = emb1_ref[...].astype(jnp.float32) - emb2_ref[...].astype(jnp.float32)
    d2 = diff * diff

    if need_mask:
        # Global row index of this (possibly clamped/overhanging) tile. Select after
        # squaring so garbage from OOB rows cannot poison the sum with NaN/Inf.
        tile_idx = p * pl.num_programs(1) + t
        row0 = tile_idx * row_tile
        rows = row0 + lax.broadcasted_iota(jnp.int32, d2.shape, 0)
        d2 = jnp.where(rows < true_b, d2, 0.0)

    # Fold the tile into the (8, D) accumulator: axis-0 sum across vregs is pure VALU
    # adds (no XLU), and the small accumulator stays register-resident within the step.
    acc_ref[...] += jnp.sum(d2.reshape(row_tile // 8, 8, d), axis=0)

    @pl.when(t == pl.num_programs(1) - 1)
    def _():
        out_ref[...] = acc_ref[...][None]


def _device_kind():
    try:
        return jax.devices()[0].device_kind.lower()
    except Exception:
        return ""


def _default_num_partials():
    # v7x has 2 TensorCores per chip; keep a single partial stream on v5e/v6e.
    return 2 if "v7" in _device_kind() else 1


def _vmem_budget_bytes():
    # Budget for the streamed inputs (2 inputs x 2 pipeline buffers). The scoped VMEM
    # limit is raised explicitly via vmem_limit_bytes in the pallas_call.
    return (12 if "v5" in _device_kind() else 16) * 1024 * 1024


def contrastive_loss(emb1, emb2, label, *, margin=MARGIN, row_tile=None, n_partials=None):
    """emb1, emb2: (B, D); label: (B,) of {0., 1.}. Returns scalar f32 loss."""
    assert emb1.ndim == 2 and emb1.shape == emb2.shape
    B, D = emb1.shape
    itemsize = jnp.dtype(emb1.dtype).itemsize
    # Sublane packing: 8 rows f32, 16 bf16, 32 int8/fp8.
    pack = max(8, 32 // itemsize)

    if row_tile is None:
        # 2 inputs x 2 pipeline buffers per row in the raw dtype; the accumulator is
        # only (8, D) f32, so it does not enter the per-row budget.
        bytes_per_row = D * 2 * 2 * itemsize
        cap = max(pack, (_vmem_budget_bytes() // bytes_per_row) // pack * pack)
        cap = min(cap, 8192)
        row_tile = min(cap, -(-B // pack) * pack)
    else:
        row_tile = max(pack, -(-row_tile // pack) * pack)

    n_tiles = -(-B // row_tile)
    if n_partials is None:
        n_partials = _default_num_partials()
    n_partials = max(1, min(n_partials, n_tiles))
    num_reduce_steps = -(-n_tiles // n_partials)
    # Mask needed if the last tile is ragged or a partial stream overhangs the array.
    need_mask = (n_partials * num_reduce_steps * row_tile) != B

    def emb_index(p, t):
        # Clamp overhang steps onto the last real tile; their rows are masked in-kernel.
        return (jnp.minimum(p * num_reduce_steps + t, n_tiles - 1), 0)

    emb_spec = pl.BlockSpec((row_tile, D), emb_index)

    kernel = functools.partial(_sumsq_kernel, true_b=B, need_mask=need_mask)

    partials = pl.pallas_call(
        kernel,
        out_shape=jax.ShapeDtypeStruct((n_partials, 8, D), jnp.float32),
        grid_spec=pltpu.PrefetchScalarGridSpec(
            num_scalar_prefetch=0,
            grid=(n_partials, num_reduce_steps),
            in_specs=[emb_spec, emb_spec],
            out_specs=pl.BlockSpec((1, 8, D), lambda p, t: (p, 0, 0)),
            scratch_shapes=[pltpu.VMEM((8, D), jnp.float32)],
        ),
        compiler_params=pltpu.CompilerParams(
            # Outer partial axis is independent (megacore-shardable on v7x);
            # inner axis is the sequential sum-of-squares reduction.
            dimension_semantics=("parallel", "arbitrary"),
            vmem_limit_bytes=32 * 1024 * 1024,
        ),
    )(emb1, emb2)

    # Tiny scalar epilogue in XLA: whole-tensor L2 norm + label-mean identity.
    #   mean_i[(1-l_i)*d^2 + l_i*h^2] = sumsq*(1-mean(l)) + h^2*mean(l)
    sumsq = jnp.sum(partials)
    dist = jnp.sqrt(sumsq)
    mean_label = jnp.mean(label.astype(jnp.float32))
    hinge = jnp.maximum(margin - dist, 0.0)
    return (1.0 - mean_label) * sumsq + mean_label * hinge * hinge


def _reference(emb1, emb2, label, margin=MARGIN):
    d = jnp.sqrt(jnp.sum((emb1.astype(jnp.float32) - emb2.astype(jnp.float32)) ** 2))
    loss = (1.0 - label) * d**2 + label * jnp.maximum(margin - d, 0.0) ** 2
    return jnp.mean(loss)


if __name__ == "__main__":
    key = jax.random.PRNGKey(0)
    k1, k2, k3 = jax.random.split(key, 3)

    B, D = 64, 128
    emb1 = jax.random.normal(k1, (B, D), dtype=jnp.float32)
    emb2 = jax.random.normal(k2, (B, D), dtype=jnp.float32)
    label = (jax.random.uniform(k3, (B,)) > 0.5).astype(jnp.float32)

    ref = _reference(emb1, emb2, label)

    # 1) Auto-tiled path (whole batch in one tile for this small B).
    loss = jax.block_until_ready(contrastive_loss(emb1, emb2, label))
    assert jnp.allclose(loss, ref, rtol=1e-5, atol=1e-4), (loss, ref)

    # 2) Forced multi-tile reduction (grid = (1 or 2, >1) depending on chip).
    loss2 = jax.block_until_ready(contrastive_loss(emb1, emb2, label, row_tile=16))
    assert jnp.allclose(loss2, ref, rtol=1e-5, atol=1e-4), (loss2, ref)

    # 3) Forced two partial streams, even tile count (exercises the "parallel" axis).
    loss3 = jax.block_until_ready(
        contrastive_loss(emb1, emb2, label, row_tile=16, n_partials=2)
    )
    assert jnp.allclose(loss3, ref, rtol=1e-5, atol=1e-4), (loss3, ref)

    # 4) Two partials with an ODD tile count: overhang step (clamped index_map, fully
    #    masked) plus a ragged last real tile (partially masked). No jnp.pad anywhere.
    Bo = 40
    e1o, e2o, lo = emb1[:Bo], emb2[:Bo], label[:Bo]
    loss4 = jax.block_until_ready(
        contrastive_loss(e1o, e2o, lo, row_tile=16, n_partials=2)
    )
    ref4 = _reference(e1o, e2o, lo)
    assert jnp.allclose(loss4, ref4, rtol=1e-5, atol=1e-4), (loss4, ref4)

    # 5) Ragged batch on the default path (single partial, in-kernel masking).
    Br = 20
    e1r, e2r, lr = emb1[:Br], emb2[:Br], label[:Br]
    loss5 = jax.block_until_ready(contrastive_loss(e1r, e2r, lr))
    ref5 = _reference(e1r, e2r, lr)
    assert jnp.allclose(loss5, ref5, rtol=1e-5, atol=1e-4), (loss5, ref5)

    print("KERNEL_OK")
</pallas_src>

<mosaic_0001>
module attributes {stable_mosaic.version = 11 : i64} {
  func.func @_sumsq_kernel(%arg0: i32, %arg1: i32, %arg2: memref<64x128xf32, #tpu.memory_space<vmem>>, %arg3: memref<64x128xf32, #tpu.memory_space<vmem>>, %arg4: memref<1x8x128xf32, #tpu.memory_space<vmem>>, %arg5: memref<8x128xf32, #tpu.memory_space<vmem>>) attributes {dimension_semantics = [#tpu.dimension_semantics<parallel>, #tpu.dimension_semantics<arbitrary>], iteration_bounds = array<i64: 1, 1>, scalar_prefetch = 0 : i64, scratch_operands = 1 : i64, tpu.core_type = #tpu.core_type<tc>, window_params = [{transform_indices = @transform_0, window_bounds = array<i64: 64, 128>}, {transform_indices = @transform_1, window_bounds = array<i64: 64, 128>}, {transform_indices = @transform_2, window_bounds = array<i64: 1, 8, 128>}]} {
    %c0_i32 = arith.constant 0 : i32
    %0 = arith.cmpi eq, %arg1, %c0_i32 : i32
    %1 = arith.extui %0 : i1 to i32
    %c0_i32_0 = arith.constant 0 : i32
    %2 = arith.cmpi ne, %1, %c0_i32_0 : i32
    scf.if %2 {
      %cst_10 = arith.constant 0.000000e+00 : f32
      %15 = vector.broadcast %cst_10 : f32 to vector<8x128xf32>
      %c0_11 = arith.constant 0 : index
      %c0_12 = arith.constant 0 : index
      %16 = vector.load %arg5[%c0_11, %c0_12] : memref<8x128xf32, #tpu.memory_space<vmem>>, vector<8x128xf32>
      tpu.vector_store %arg5[%c0_11, %c0_12], %15 {strides = array<i32>} : memref<8x128xf32, #tpu.memory_space<vmem>>, vector<8x128xf32>,
    } else {
    }
    %c0 = arith.constant 0 : index
    %c0_1 = arith.constant 0 : index
    %3 = vector.load %arg2[%c0, %c0_1] : memref<64x128xf32, #tpu.memory_space<vmem>>, vector<64x128xf32>
    %c0_2 = arith.constant 0 : index
    %c0_3 = arith.constant 0 : index
    %4 = vector.load %arg3[%c0_2, %c0_3] : memref<64x128xf32, #tpu.memory_space<vmem>>, vector<64x128xf32>
    %5 = arith.subf %3, %4 : vector<64x128xf32>
    %6 = arith.mulf %5, %5 : vector<64x128xf32>
    %c0_4 = arith.constant 0 : index
    %c0_5 = arith.constant 0 : index
    %7 = vector.load %arg5[%c0_4, %c0_5] : memref<8x128xf32, #tpu.memory_space<vmem>>, vector<8x128xf32>
    %8 = vector.shape_cast %6 : vector<64x128xf32> to vector<8x8x128xf32>
    %cst = arith.constant dense<0.000000e+00> : vector<8x128xf32>
    %9 = vector.multi_reduction <add>, %8, %cst [0] : vector<8x8x128xf32> to vector<8x128xf32>
    %10 = arith.addf %7, %9 : vector<8x128xf32>
    %c0_6 = arith.constant 0 : index
    %c0_7 = arith.constant 0 : index
    %11 = vector.load %arg5[%c0_6, %c0_7] : memref<8x128xf32, #tpu.memory_space<vmem>>, vector<8x128xf32>
    tpu.vector_store %arg5[%c0_6, %c0_7], %10 {strides = array<i32>} : memref<8x128xf32, #tpu.memory_space<vmem>>, vector<8x128xf32>,
    %c0_i32_8 = arith.constant 0 : i32
    %12 = arith.cmpi eq, %arg1, %c0_i32_8 : i32
    %13 = arith.extui %12 : i1 to i32
    %c0_i32_9 = arith.constant 0 : i32
    %14 = arith.cmpi ne, %13, %c0_i32_9 : i32
    scf.if %14 {
      %c0_10 = arith.constant 0 : index
      %c0_11 = arith.constant 0 : index
      %15 = vector.load %arg5[%c0_10, %c0_11] : memref<8x128xf32, #tpu.memory_space<vmem>>, vector<8x128xf32>
      %16 = vector.shape_cast %15 : vector<8x128xf32> to vector<1x8x128xf32>
      %c0_12 = arith.constant 0 : index
      %c0_13 = arith.constant 0 : index
      %c0_14 = arith.constant 0 : index
      %17 = vector.load %arg4[%c0_12, %c0_13, %c0_14] : memref<1x8x128xf32, #tpu.memory_space<vmem>>, vector<1x8x128xf32>
      tpu.vector_store %arg4[%c0_12, %c0_13, %c0_14], %16 {strides = array<i32>} : memref<1x8x128xf32, #tpu.memory_space<vmem>>, vector<1x8x128xf32>,
    } else {
    }
    return
  }
  func.func @transform_0(%arg0: i32, %arg1: i32) -> (i32, i32) {
    %c1_i32 = arith.constant 1 : i32
    %0 = arith.muli %arg0, %c1_i32 : i32
    %1 = arith.addi %0, %arg1 : i32
    %c0_i32 = arith.constant 0 : i32
    %2 = arith.minsi %1, %c0_i32 : i32
    %c0_i32_0 = arith.constant 0 : i32
    %c0_i32_1 = arith.constant 0 : i32
    return %2, %c0_i32_0 : i32, i32
  }
  func.func @transform_1(%arg0: i32, %arg1: i32) -> (i32, i32) {
    %c1_i32 = arith.constant 1 : i32
    %0 = arith.muli %arg0, %c1_i32 : i32
    %1 = arith.addi %0, %arg1 : i32
    %c0_i32 = arith.constant 0 : i32
    %2 = arith.minsi %1, %c0_i32 : i32
    %c0_i32_0 = arith.constant 0 : i32
    %c0_i32_1 = arith.constant 0 : i32
    return %2, %c0_i32_0 : i32, i32
  }
  func.func @transform_2(%arg0: i32, %arg1: i32) -> (i32, i32, i32) {
    %c0_i32 = arith.constant 0 : i32
    %c0_i32_0 = arith.constant 0 : i32
    %c0_i32_1 = arith.constant 0 : i32
    return %arg0, %c0_i32, %c0_i32_0 : i32, i32, i32
  }
}

</mosaic_0001>

<bundles_post_ra>
// kernel: tpu_custom_call.1
= control target key start
LH: loop header
LB: loop body
LE: loop exit
PB: predicated region body
PF: predicated region fallthrough
CT: control target
= control target key end

     0   :  { %7 = vsyncpa [#allocation4], 0  ;;  %s250_s0 = inlined_call_operand.hbm [shape: f32[64,128], index: 0, kind: input, shape index: {}]   ;;  %s251_s1 = inlined_call_operand.hbm [shape: f32[64,128], index: 1, kind: input, shape index: {}]   ;;  %s252_s2 = inlined_call_operand.hbm [shape: f32[1,8,128], index: 2, kind: output, shape index: {}]  }
   0x1   :  { %8 = vsyncpa [#allocation7], 0 }
   0x2   :  { %9 = vsyncpa [#allocation5], 0  ;;  %s20_s11 = sshll.u32 %s250_s0, 4  ;;  %s221_s12 = smov [#allocation3]   ;;  %s21_s11 = int_to_ptr.hbm [resolvable:$true] %s20_s11 }
   0x3   :  { %s22_s13 = sshll.u32 %s221_s12, 4  ;;  %s39_s16 = sshll.u32 %s251_s1, 4  ;;  %s23_s13 = int_to_ptr.vmem [resolvable:$true] %s22_s13  ;;  %s40_s16 = int_to_ptr.hbm [resolvable:$true] %s39_s16 }
   0x4   :  { %s222_s17 = smov 128   ;;  %s223_s18 = smov 8  }
   0x5   :  { %28 = dma.hbm_to_vmem [thread:$0]  %s21_s11, 1024, %s23_s13, [#allocation4], %s222_s17, %s222_s17, %s223_s18  }
   0x6   :  { %s224_s19 = smov [#allocation6]  }
   0x7   :  { %s41_s20 = sshll.u32 %s224_s19, 4  ;;  %s42_s20 = int_to_ptr.vmem [resolvable:$true] %s41_s20 }
   0x8   :  { %47 = dma.hbm_to_vmem [thread:$0]  %s40_s16, 1024, %s42_s20, [#allocation7], %s222_s17, %s222_s17, %s223_s18  }
   0x9   :  { %215 = dma.done.wait [#allocation4], 1024  }
   0xa   :  { %216 = vsyncadd [#allocation4], 4294966272 }
   0xb   :  { %217 = dma.done.wait [#allocation7], 1024  }
   0xc   :  { %218 = vsyncadd [#allocation7], 4294966272  ;;  %v69_v0 = vld [vmem:[#allocation3] sm:$0xff]  ;;  %v70_v1 = vld [vmem:[#allocation3 + $0x8] sm:$0xff]  ;;  %s225_s0 = smov [#allocation8]   ;;  %s123_s23 = sshll.u32 %s252_s2, 4  ;;  %s124_s23 = int_to_ptr.hbm [resolvable:$true] %s123_s23 }
   0xd   :  { %v71_v2 = vld [vmem:[#allocation3 + $0x10] sm:$0xff]  ;;  %v72_v3 = vld [vmem:[#allocation3 + $0x18] sm:$0xff]  ;;  %v73_v4 = vld [vmem:[#allocation3 + $0x20] sm:$0xff]  ;;  %s121_s1 = sshll.u32 %s225_s0, 4  ;;  %s122_s1 = int_to_ptr.vmem [resolvable:$true] %s121_s1 }
   0xe   :  { %v77_v5 = vld [vmem:[#allocation6] sm:$0xff]  ;;  %v78_v6 = vld [vmem:[#allocation6 + $0x8] sm:$0xff]  ;;  %v79_v7 = vld [vmem:[#allocation6 + $0x10] sm:$0xff] }
   0xf   :  { %v80_v8 = vld [vmem:[#allocation6 + $0x18] sm:$0xff]  ;;  %v85_v9 = vsub.f32 %v69_v0, %v77_v5  ;;  %v81_v10 = vld [vmem:[#allocation6 + $0x20] sm:$0xff]  ;;  %v86_v11 = vsub.f32 %v70_v1, %v78_v6  ;;  %v87_v12 = vsub.f32 %v71_v2, %v79_v7  ;;  %v74_v14 = vld [vmem:[#allocation3 + $0x28] sm:$0xff] }
  0x10   :  { %v88_v13 = vsub.f32 %v72_v3, %v80_v8  ;;  %v82_v15 = vld [vmem:[#allocation6 + $0x28] sm:$0xff]  ;;  %v89_v17 = vsub.f32 %v73_v4, %v81_v10  ;;  %v75_v20 = vld [vmem:[#allocation3 + $0x30] sm:$0xff]  ;;  %v76_v25 = vld [vmem:[#allocation3 + $0x38] sm:$0xff] }
  0x11   :  { %v93_v16 = vmul.f32 %v85_v9, %v85_v9  ;;  %v94_v18 = vmul.f32 %v86_v11, %v86_v11  ;;  %v95_v19 = vmul.f32 %v87_v12, %v87_v12  ;;  %v83_v21 = vld [vmem:[#allocation6 + $0x30] sm:$0xff]  ;;  %v90_v22 = vsub.f32 %v74_v14, %v82_v15  ;;  %v84_v26 = vld [vmem:[#allocation6 + $0x38] sm:$0xff] }
  0x12   :  { %v96_v23 = vmul.f32 %v88_v13, %v88_v13  ;;  %v91_v27 = vsub.f32 %v75_v20, %v83_v21  ;;  %v97_v28 = vmul.f32 %v89_v17, %v89_v17  ;;  %v92_v30 = vsub.f32 %v76_v25, %v84_v26 }
  0x13   :  { %v102_v24 = vadd.f32 %v94_v18, %v93_v16  ;;  %v98_v31 = vmul.f32 %v90_v22, %v90_v22 }
  0x14   :  { %v99_v33 = vmul.f32 %v91_v27, %v91_v27  ;;  %v100_v35 = vmul.f32 %v92_v30, %v92_v30 }
  0x15   :  { %v103_v29 = vadd.f32 %v102_v24, %v95_v19 }
  0x17   :  { %v104_v32 = vadd.f32 %v103_v29, %v96_v23 }
  0x19   :  { %v105_v34 = vadd.f32 %v104_v32, %v97_v28 }
  0x1b   :  { %v106_v36 = vadd.f32 %v105_v34, %v98_v31 }
  0x1d   :  { %v107_v37 = vadd.f32 %v106_v36, %v99_v33 }
  0x1f   :  { %v108_v38 = vadd.f32 %v107_v37, %v100_v35 }
  0x21   :  { %115 = vst [vmem:[#allocation8] sm:$0xff] %v108_v38 }
  0x22   :  { %126 = dma.vmem_to_hbm [thread:$0]  %s122_s1, 128, %s124_s23, [#allocation5]  }
  0x23   :  { %219 = dma.done.wait [#allocation5], 128  }
  0x24   :  { %220 = vsyncadd [#allocation5], 4294967168 }
  0x25   :  { %131 = vsyncpa [#allocation4], 1 }
  0x26   :  { %132 = vsyncpa [#allocation7], 1 }
  0x27   :  { %133 = vsyncpa [#allocation5], 1 }

</bundles_post_ra>
